<compile_context>
chip_gen: v5e
topology: v5e:2x2
jax: 0.10.0
libtpu: 0.0.40
codegen_flags: <defaults>
</compile_context>

<pallas_src>
import jax
import jax.numpy as jnp
from jax import lax
from jax.experimental import pallas as pl
from jax.experimental.pallas import tpu as pltpu


def _flash_attend_kernel(q_ref, k_ref, v_ref, o_ref, m_ref, l_ref, acc_ref):
    # q_ref: (TQ, D), k_ref/v_ref: (TK, D), o_ref: (TQ, D)
    # m_ref/l_ref: (TQ, 1) f32, acc_ref: (TQ, D) f32 — persist across the KV axis.
    kv = pl.program_id(2)

    @pl.when(kv == 0)
    def _init():
        m_ref[...] = jnp.full_like(m_ref, -jnp.inf)
        l_ref[...] = jnp.zeros_like(l_ref)
        acc_ref[...] = jnp.zeros_like(acc_ref)

    d = q_ref.shape[-1]
    scale = d ** (-0.5)

    # Fold the softmax scale into q in f32, then feed the MXU bf16 operands.
    q = (q_ref[...].astype(jnp.float32) * scale).astype(jnp.bfloat16)
    k = k_ref[...].astype(jnp.bfloat16)
    v = v_ref[...].astype(jnp.bfloat16)

    # s[i, j] = sum_d q[i, d] * k[j, d]  — contract D directly (no k.T copy).
    s = lax.dot_general(
        q, k,
        dimension_numbers=(((1,), (1,)), ((), ())),
        preferred_element_type=jnp.float32,
    )  # (TQ, TK) f32

    # Online (streaming) softmax update, all in f32.
    m_prev = m_ref[...]
    m_new = jnp.maximum(m_prev, jnp.max(s, axis=-1, keepdims=True))
    alpha = jnp.exp(m_prev - m_new)          # exp(-inf) = 0 on the first step
    p = jnp.exp(s - m_new)                   # (TQ, TK) f32
    l_ref[...] = alpha * l_ref[...] + jnp.sum(p, axis=-1, keepdims=True)
    acc_ref[...] = alpha * acc_ref[...] + lax.dot_general(
        p.astype(jnp.bfloat16), v,
        dimension_numbers=(((1,), (0,)), ((), ())),
        preferred_element_type=jnp.float32,
    )
    m_ref[...] = m_new

    # attn_dropout with p = 0.0 -> identity (eval mode); nothing to do.

    @pl.when(kv == pl.num_programs(2) - 1)
    def _finalize():
        inv_l = pl.reciprocal(l_ref[...], approx=True)
        o_ref[...] = (acc_ref[...] * inv_l).astype(o_ref.dtype)


def _choose_tile(dim, target):
    """Largest multiple-of-8 divisor of `dim` that is <= target, else full dim."""
    if dim <= target:
        return dim
    t = (target // 8) * 8
    while t >= 8:
        if dim % t == 0:
            return t
        t -= 8
    return dim


def attend(q, k, v):
    """q: (B, H, N, D), k/v: (B, H, M, D) -> (B, H, N, D). Eval-mode attention."""
    B, H, N, D = q.shape
    _, _, M, _ = k.shape
    assert k.shape == (B, H, M, D) and v.shape == (B, H, M, D)

    # Free (metadata-only) reshape: fold batch and heads into one parallel axis.
    BH = B * H
    q3 = q.reshape(BH, N, D)
    k3 = k.reshape(BH, M, D)
    v3 = v.reshape(BH, M, D)

    # MXU-filling tiles for large sequences; full extent for small ones.
    tq = _choose_tile(N, 128)
    tk = _choose_tile(M, 256)
    n_q = N // tq
    n_kv = M // tk

    q_spec = pl.BlockSpec((None, tq, D), lambda bh, qi, ki: (bh, qi, 0))
    k_spec = pl.BlockSpec((None, tk, D), lambda bh, qi, ki: (bh, ki, 0))
    v_spec = pl.BlockSpec((None, tk, D), lambda bh, qi, ki: (bh, ki, 0))
    o_spec = pl.BlockSpec((None, tq, D), lambda bh, qi, ki: (bh, qi, 0))

    # Explicit scoped-VMEM budget (v5e defaults to 16 MiB): double-buffered
    # q/k/v/o tiles + f32 scratch (lane-padded), with 2x headroom, >= 32 MiB,
    # capped below v7x's 64 MiB physical VMEM.
    itemsize = jnp.dtype(q.dtype).itemsize
    lane = 128
    tile_bytes = 2 * (2 * tq * D + 2 * tk * D) * itemsize
    scratch_bytes = (2 * tq * lane + tq * max(D, lane)) * 4
    vmem_limit = int(min(max(2 * (tile_bytes + scratch_bytes), 32 << 20), 48 << 20))

    out3 = pl.pallas_call(
        _flash_attend_kernel,
        out_shape=jax.ShapeDtypeStruct((BH, N, D), q.dtype),
        grid_spec=pltpu.PrefetchScalarGridSpec(
            num_scalar_prefetch=0,
            grid=(BH, n_q, n_kv),
            in_specs=[q_spec, k_spec, v_spec],
            out_specs=o_spec,
            scratch_shapes=[
                pltpu.VMEM((tq, 1), jnp.float32),   # running max m
                pltpu.VMEM((tq, 1), jnp.float32),   # running denom l
                pltpu.VMEM((tq, D), jnp.float32),   # running accumulator
            ],
        ),
        compiler_params=pltpu.CompilerParams(
            dimension_semantics=("parallel", "parallel", "arbitrary"),
            vmem_limit_bytes=vmem_limit,
        ),
    )(q3, k3, v3)

    # Free metadata reshape back to the PyTorch layout (no transpose, no HBM pass).
    return out3.reshape(B, H, N, D)


def attend_ref(q, k, v):
    """Pure-JAX reference mirroring the PyTorch forward (eval mode)."""
    scale = q.shape[-1] ** (-0.5)
    sim = jnp.einsum("bhid,bhjd->bhij", q, k) * scale
    attn = jax.nn.softmax(sim, axis=-1)
    return jnp.einsum("bhij,bhjd->bhid", attn, v)


if __name__ == "__main__":
    key = jax.random.PRNGKey(0)
    kq, kk, kv = jax.random.split(key, 3)

    B, H, N, D = 2, 4, 8, 32  # small shapes consistent with the forward pass
    q = jax.random.normal(kq, (B, H, N, D), dtype=jnp.float32)
    k = jax.random.normal(kk, (B, H, N, D), dtype=jnp.float32)
    v = jax.random.normal(kv, (B, H, N, D), dtype=jnp.float32)

    out = attend(q, k, v)
    out = jax.block_until_ready(out)

    ref = attend_ref(q, k, v)
    assert out.shape == (B, H, N, D)
    # bf16 MXU operands + approx reciprocal -> ~1e-2 error budget vs f32 ref.
    max_err = jnp.max(jnp.abs(out - ref))
    assert jnp.allclose(out, ref, atol=2e-2, rtol=2e-2), f"max abs err {max_err}"

    print("KERNEL_OK")
</pallas_src>

<mosaic_0001>
module attributes {stable_mosaic.version = 11 : i64} {
  func.func @_flash_attend_kernel(%arg0: i32, %arg1: i32, %arg2: i32, %arg3: memref<1x8x32xf32, #tpu.memory_space<vmem>>, %arg4: memref<1x8x32xf32, #tpu.memory_space<vmem>>, %arg5: memref<1x8x32xf32, #tpu.memory_space<vmem>>, %arg6: memref<1x8x32xf32, #tpu.memory_space<vmem>>, %arg7: memref<8x1xf32, #tpu.memory_space<vmem>>, %arg8: memref<8x1xf32, #tpu.memory_space<vmem>>, %arg9: memref<8x32xf32, #tpu.memory_space<vmem>>) attributes {dimension_semantics = [#tpu.dimension_semantics<parallel>, #tpu.dimension_semantics<parallel>, #tpu.dimension_semantics<arbitrary>], iteration_bounds = array<i64: 8, 1, 1>, scalar_prefetch = 0 : i64, scratch_operands = 3 : i64, tpu.core_type = #tpu.core_type<tc>, window_params = [{transform_indices = @transform_0, window_bounds = array<i64: 1, 8, 32>}, {transform_indices = @transform_1, window_bounds = array<i64: 1, 8, 32>}, {transform_indices = @transform_2, window_bounds = array<i64: 1, 8, 32>}, {transform_indices = @transform_3, window_bounds = array<i64: 1, 8, 32>}]} {
    %c0_i32 = arith.constant 0 : i32
    %0 = arith.cmpi eq, %arg2, %c0_i32 : i32
    %1 = arith.extui %0 : i1 to i32
    %c0_i32_0 = arith.constant 0 : i32
    %2 = arith.cmpi ne, %1, %c0_i32_0 : i32
    scf.if %2 {
      %cst_27 = arith.constant 0xFF800000 : f32
      %41 = vector.broadcast %cst_27 : f32 to vector<8x1xf32>
      %c0_28 = arith.constant 0 : index
      %c0_29 = arith.constant 0 : index
      %42 = vector.load %arg7[%c0_28, %c0_29] : memref<8x1xf32, #tpu.memory_space<vmem>>, vector<8x1xf32>
      tpu.vector_store %arg7[%c0_28, %c0_29], %41 {strides = array<i32>} : memref<8x1xf32, #tpu.memory_space<vmem>>, vector<8x1xf32>,
      %cst_30 = arith.constant 0.000000e+00 : f32
      %43 = vector.broadcast %cst_30 : f32 to vector<8x1xf32>
      %c0_31 = arith.constant 0 : index
      %c0_32 = arith.constant 0 : index
      %44 = vector.load %arg8[%c0_31, %c0_32] : memref<8x1xf32, #tpu.memory_space<vmem>>, vector<8x1xf32>
      tpu.vector_store %arg8[%c0_31, %c0_32], %43 {strides = array<i32>} : memref<8x1xf32, #tpu.memory_space<vmem>>, vector<8x1xf32>,
      %cst_33 = arith.constant 0.000000e+00 : f32
      %45 = vector.broadcast %cst_33 : f32 to vector<8x32xf32>
      %c0_34 = arith.constant 0 : index
      %c0_35 = arith.constant 0 : index
      %46 = vector.load %arg9[%c0_34, %c0_35] : memref<8x32xf32, #tpu.memory_space<vmem>>, vector<8x32xf32>
      tpu.vector_store %arg9[%c0_34, %c0_35], %45 {strides = array<i32>} : memref<8x32xf32, #tpu.memory_space<vmem>>, vector<8x32xf32>,
    } else {
    }
    %c0 = arith.constant 0 : index
    %c0_1 = arith.constant 0 : index
    %c0_2 = arith.constant 0 : index
    %3 = vector.load %arg3[%c0, %c0_1, %c0_2] : memref<1x8x32xf32, #tpu.memory_space<vmem>>, vector<1x8x32xf32>
    %4 = vector.shape_cast %3 : vector<1x8x32xf32> to vector<8x32xf32>
    %cst = arith.constant 0.176776692 : f32
    %5 = vector.broadcast %cst : f32 to vector<8x32xf32>
    %6 = arith.mulf %4, %5 : vector<8x32xf32>
    %7 = arith.truncf %6 : vector<8x32xf32> to vector<8x32xbf16>
    %c0_3 = arith.constant 0 : index
    %c0_4 = arith.constant 0 : index
    %c0_5 = arith.constant 0 : index
    %8 = vector.load %arg4[%c0_3, %c0_4, %c0_5] : memref<1x8x32xf32, #tpu.memory_space<vmem>>, vector<1x8x32xf32>
    %9 = vector.shape_cast %8 : vector<1x8x32xf32> to vector<8x32xf32>
    %10 = arith.truncf %9 : vector<8x32xf32> to vector<8x32xbf16>
    %c0_6 = arith.constant 0 : index
    %c0_7 = arith.constant 0 : index
    %c0_8 = arith.constant 0 : index
    %11 = vector.load %arg5[%c0_6, %c0_7, %c0_8] : memref<1x8x32xf32, #tpu.memory_space<vmem>>, vector<1x8x32xf32>
    %12 = vector.shape_cast %11 : vector<1x8x32xf32> to vector<8x32xf32>
    %13 = arith.truncf %12 : vector<8x32xf32> to vector<8x32xbf16>
    %cst_9 = arith.constant dense<0.000000e+00> : vector<8x8xf32>
    %14 = tpu.matmul %7, %10, %cst_9 {dimension_numbers = #tpu.dot_dimension_numbers<[1], [1], [0], [0], [0, 0, 1, 0], [], []>} : vector<8x32xbf16>, vector<8x32xbf16>, vector<8x8xf32> -> vector<8x8xf32>
    %c0_10 = arith.constant 0 : index
    %c0_11 = arith.constant 0 : index
    %15 = vector.load %arg7[%c0_10, %c0_11] : memref<8x1xf32, #tpu.memory_space<vmem>>, vector<8x1xf32>
    %cst_12 = arith.constant dense<0xFF800000> : vector<8xf32>
    %16 = vector.multi_reduction <maximumf>, %14, %cst_12 [1] : vector<8x8xf32> to vector<8xf32>
    %17 = vector.shape_cast %16 : vector<8xf32> to vector<8x1xf32>
    %18 = arith.maximumf %15, %17 : vector<8x1xf32>
    %19 = arith.subf %15, %18 : vector<8x1xf32>
    %20 = math.exp %19 : vector<8x1xf32>
    %21 = vector.broadcast %18 : vector<8x1xf32> to vector<8x8xf32>
    %22 = arith.subf %14, %21 : vector<8x8xf32>
    %23 = math.exp %22 : vector<8x8xf32>
    %c0_13 = arith.constant 0 : index
    %c0_14 = arith.constant 0 : index
    %24 = vector.load %arg8[%c0_13, %c0_14] : memref<8x1xf32, #tpu.memory_space<vmem>>, vector<8x1xf32>
    %25 = arith.mulf %20, %24 : vector<8x1xf32>
    %cst_15 = arith.constant dense<0.000000e+00> : vector<8xf32>
    %26 = vector.multi_reduction <add>, %23, %cst_15 [1] : vector<8x8xf32> to vector<8xf32>
    %27 = vector.shape_cast %26 : vector<8xf32> to vector<8x1xf32>
    %28 = arith.addf %25, %27 : vector<8x1xf32>
    %c0_16 = arith.constant 0 : index
    %c0_17 = arith.constant 0 : index
    %29 = vector.load %arg8[%c0_16, %c0_17] : memref<8x1xf32, #tpu.memory_space<vmem>>, vector<8x1xf32>
    tpu.vector_store %arg8[%c0_16, %c0_17], %28 {strides = array<i32>} : memref<8x1xf32, #tpu.memory_space<vmem>>, vector<8x1xf32>,
    %c0_18 = arith.constant 0 : index
    %c0_19 = arith.constant 0 : index
    %30 = vector.load %arg9[%c0_18, %c0_19] : memref<8x32xf32, #tpu.memory_space<vmem>>, vector<8x32xf32>
    %31 = vector.broadcast %20 : vector<8x1xf32> to vector<8x32xf32>
    %32 = arith.mulf %31, %30 : vector<8x32xf32>
    %33 = arith.truncf %23 : vector<8x8xf32> to vector<8x8xbf16>
    %cst_20 = arith.constant dense<0.000000e+00> : vector<8x32xf32>
    %34 = tpu.matmul %33, %13, %cst_20 {dimension_numbers = #tpu.dot_dimension_numbers<[1], [0], [0], [1], [0, 0, 1, 1], [], []>} : vector<8x8xbf16>, vector<8x32xbf16>, vector<8x32xf32> -> vector<8x32xf32>
    %35 = arith.addf %32, %34 : vector<8x32xf32>
    %c0_21 = arith.constant 0 : index
    %c0_22 = arith.constant 0 : index
    %36 = vector.load %arg9[%c0_21, %c0_22] : memref<8x32xf32, #tpu.memory_space<vmem>>, vector<8x32xf32>
    tpu.vector_store %arg9[%c0_21, %c0_22], %35 {strides = array<i32>} : memref<8x32xf32, #tpu.memory_space<vmem>>, vector<8x32xf32>,
    %c0_23 = arith.constant 0 : index
    %c0_24 = arith.constant 0 : index
    %37 = vector.load %arg7[%c0_23, %c0_24] : memref<8x1xf32, #tpu.memory_space<vmem>>, vector<8x1xf32>
    tpu.vector_store %arg7[%c0_23, %c0_24], %18 {strides = array<i32>} : memref<8x1xf32, #tpu.memory_space<vmem>>, vector<8x1xf32>,
    %c0_i32_25 = arith.constant 0 : i32
    %38 = arith.cmpi eq, %arg2, %c0_i32_25 : i32
    %39 = arith.extui %38 : i1 to i32
    %c0_i32_26 = arith.constant 0 : i32
    %40 = arith.cmpi ne, %39, %c0_i32_26 : i32
    scf.if %40 {
      %c0_27 = arith.constant 0 : index
      %c0_28 = arith.constant 0 : index
      %41 = vector.load %arg8[%c0_27, %c0_28] : memref<8x1xf32, #tpu.memory_space<vmem>>, vector<8x1xf32>
      %42 = tpu.reciprocal %41 {approx = true} : vector<8x1xf32> -> vector<8x1xf32>
      %c0_29 = arith.constant 0 : index
      %c0_30 = arith.constant 0 : index
      %43 = vector.load %arg9[%c0_29, %c0_30] : memref<8x32xf32, #tpu.memory_space<vmem>>, vector<8x32xf32>
      %44 = vector.broadcast %42 : vector<8x1xf32> to vector<8x32xf32>
      %45 = arith.mulf %43, %44 : vector<8x32xf32>
      %c0_31 = arith.constant 0 : index
      %c0_32 = arith.constant 0 : index
      %c0_33 = arith.constant 0 : index
      %46 = vector.load %arg6[%c0_31, %c0_32, %c0_33] : memref<1x8x32xf32, #tpu.memory_space<vmem>>, vector<1x8x32xf32>
      %47 = vector.shape_cast %46 : vector<1x8x32xf32> to vector<8x32xf32>
      %48 = vector.shape_cast %45 : vector<8x32xf32> to vector<1x8x32xf32>
      tpu.vector_store %arg6[%c0_31, %c0_32, %c0_33], %48 {strides = array<i32>} : memref<1x8x32xf32, #tpu.memory_space<vmem>>, vector<1x8x32xf32>,
    } else {
    }
    return
  }
  func.func @transform_0(%arg0: i32, %arg1: i32, %arg2: i32) -> (i32, i32, i32) {
    %c0_i32 = arith.constant 0 : i32
    %c0_i32_0 = arith.constant 0 : i32
    return %arg0, %arg1, %c0_i32 : i32, i32, i32
  }
  func.func @transform_1(%arg0: i32, %arg1: i32, %arg2: i32) -> (i32, i32, i32) {
    %c0_i32 = arith.constant 0 : i32
    %c0_i32_0 = arith.constant 0 : i32
    return %arg0, %arg2, %c0_i32 : i32, i32, i32
  }
  func.func @transform_2(%arg0: i32, %arg1: i32, %arg2: i32) -> (i32, i32, i32) {
    %c0_i32 = arith.constant 0 : i32
    %c0_i32_0 = arith.constant 0 : i32
    return %arg0, %arg2, %c0_i32 : i32, i32, i32
  }
  func.func @transform_3(%arg0: i32, %arg1: i32, %arg2: i32) -> (i32, i32, i32) {
    %c0_i32 = arith.constant 0 : i32
    %c0_i32_0 = arith.constant 0 : i32
    return %arg0, %arg1, %c0_i32 : i32, i32, i32
  }
}

</mosaic_0001>

<bundles_post_ra>
// kernel: tpu_custom_call.1
= control target key start
LH: loop header
LB: loop body
LE: loop exit
PB: predicated region body
PF: predicated region fallthrough
CT: control target
= control target key end

     0   :  { %s1018_s0 = inlined_call_operand.hbm [shape: f32[8,8,32], index: 0, kind: input, shape index: {}]   ;;  %s1019_s1 = inlined_call_operand.hbm [shape: f32[8,8,32], index: 1, kind: input, shape index: {}]   ;;  %s1020_s2 = inlined_call_operand.hbm [shape: f32[8,8,32], index: 2, kind: input, shape index: {}]   ;;  %s1021_s3 = inlined_call_operand.hbm [shape: f32[8,8,32], index: 3, kind: output, shape index: {}]  }
   0x1   :  { %1024 = sst [smem:[#allocation18_spill]] %s1019_s1 }
   0x2   :  { %8 = vsyncpa [#allocation6], 0 }
   0x3   :  { %10 = vsyncpa [#allocation6 + $0x1], 0 }
   0x4   :  { %11 = vsyncpa [#allocation9], 0 }
   0x5   :  { %13 = vsyncpa [#allocation9 + $0x1], 0 }
   0x6   :  { %14 = vsyncpa [#allocation7], 0 }
   0x7   :  { %16 = vsyncpa [#allocation7 + $0x1], 0  ;;  %s850_s12 = smov 0   ;;  %s852_s13 = smov 0  }
   0x8   :  { %s854_s14 = smov 0   ;;  %s856_s15 = smov 0  }
   0x9   :  { %s858_s16 = smov 0   ;;  %s860_s17 = smov 0  }
   0xa LB: > { %1025 = sst [smem:[#allocation15_spill]] %s821_s16  ;;  %s881_s18 = sadd.s32 4294967295, %s825_s17   ;;  %s825_s17 = sphi %s860_s17, %s22_s17   ;;  %s821_s16 = sphi %s858_s16, %s1037_s16   ;;  %s817_s15 = sphi %s856_s15, %s1036_s15   ;;  %s813_s14 = sphi %s854_s14, %s1040_s14   ;;  %s809_s13 = sphi %s852_s13, %s1039_s13   ;;  %s805_s12 = sphi %s850_s12, %s1038_s12  }
   0xb   : > { %s545_s19 = sadd.s32 4294967294, %s825_s17   ;;  %s41_s20 = sadd.s32 1, %s821_s16 }
   0xc   : > { %s50_s21 = sadd.s32 1, %s813_s14  ;;  %p43_p0 = scmp.ge.s32.totalorder %s41_s20, 8 }
   0xd   : > { %p57_p1 = scmp.ne.s32.totalorder %s813_s14, %s809_s13  ;;  %p58_p2 = scmp.eq.s32.totalorder %s825_s17, 0 }
   0xe   : > { %p63_p3 = scmp.ne.s32.totalorder %s809_s13, %s805_s12  ;;  %s1042_s20 = smov (%p43_p0, %s41_s20), 0 }
   0xf   : > { %1026 = sst [smem:[#allocation16_spill]] %s1042_s20  ;;  %p893_p4 = por %p58_p2, %p57_p1 }
  0x10   : > { %p64_p5 = scmp.eq.s32.totalorder %s881_s18, 0  ;;  %s45_s23 = ssub.s32 %s821_s16, %s1042_s20 }
  0x11   : > { %p145_p6 = scmp.eq.s32.totalorder %s881_s18, 7  ;;  %p48_p7 = scmp.eq.s32.totalorder %s45_s23, 0 }
  0x12   : > { %p901_p8 = por %p64_p5, %p63_p3  ;;  %p151_p10 = scmp.eq.s32.totalorder %s545_s19, 7 }
  0x13   : > { %p905_p9 = por %p145_p6, %p57_p1  ;;  %p587_p12 = scmp.lt.s32.totalorder %s825_s17, 8 }
  0x14   : > { %s910_s26 = scalar_select %p48_p7, %s813_s14, %s50_s21  }
  0x15   : > { %p912_p11 = por %p151_p10, %p63_p3  ;;  %s171_s28 = sand.u32 1, %s813_s14  }
  0x16   : > { %1030 = sst [smem:[#allocation17_spill]] %s910_s26  ;;  %s548_s29 = sshll.u32 %s171_s28, 3 }
  0x17   : > { %s549_s30 = sshll.u32 %s821_s16, 3  ;;  %p921_p13 = pnand %p587_p12, %p893_p4 }
  0x18   : > { %s191_s5 = sand.u32 1, %s825_s17   ;;  %s1033_s1 = sld [smem:[#allocation18_spill]] }
  0x19   : > { %s195_s10 = scalar_lea.vmem [#allocation8], %s548_s29  ;;  %s192_s19 = scalar_lea.sflag [#allocation9], %s191_s5 }
  0x1a   : > { %s204_s11 = sshll.u32 %s195_s10, 4  ;;  %p554_p0 = scmp.ge.s32.totalorder %s825_s17, 1  ;;  %s205_s11 = int_to_ptr.vmem [resolvable:$true] %s204_s11 }
  0x1b   : > { %p229_p1 = scmp.lt.s32.totalorder %s825_s17, 9  ;;  %s180_s6 = scalar_lea.hbm %s1018_s0, %s549_s30 }
  0x1c   : > { %s182_s7 = sshll.u32 %s180_s6, 4  ;;  %s172_s10 = scalar_lea.sflag [#allocation6], %s171_s28  ;;  %s183_s7 = int_to_ptr.hbm [resolvable:$true] %s182_s7 }
  0x1d   : > { %p933_p2 = pnand %p554_p0, %p229_p1  ;;  %s215_s16 = scalar_lea.vmem [#allocation10], %s548_s29 }
  0x1e   : > { %s200_s8 = scalar_lea.hbm %s1033_s1, %s549_s30  ;;  %s224_s26 = sshll.u32 %s215_s16, 4  ;;  %s225_s26 = int_to_ptr.vmem [resolvable:$true] %s224_s26 }
  0x1f   : > { %s202_s9 = sshll.u32 %s200_s8, 4  ;;  %s175_s8 = scalar_lea.vmem [#allocation5], %s548_s29  ;;  %s203_s9 = int_to_ptr.hbm [resolvable:$true] %s202_s9 }
  0x20   : > { %579 = dma.hbm_to_vmem [thread:$0]  (!%p921_p13), %s203_s9, 128, %s205_s11, %s192_s19  }
  0x21   : > { %s184_s1 = sshll.u32 %s175_s8, 4  ;;  %s220_s11 = scalar_lea.hbm %s1020_s2, %s549_s30  ;;  %s185_s1 = int_to_ptr.vmem [resolvable:$true] %s184_s1 }
  0x22   : > { %576 = dma.hbm_to_vmem [thread:$0]  (!%p921_p13), %s183_s7, 128, %s185_s1, %s172_s10  }
  0x23   : > { %s222_s20 = sshll.u32 %s220_s11, 4  ;;  %233 = sbr.rel (%p933_p2) target bundleno = 656 (0x290), region = 32  ;;  %s223_s20 = int_to_ptr.hbm [resolvable:$true] %s222_s20 }
  0x24   : > { %582 = dma.hbm_to_vmem [thread:$0]  (!%p921_p13), %s223_s20, 128, %s225_s26, %s192_s19  }
  0x25   : > { %s950_s22 = sand.u32 (!%p933_p2), 1, %s809_s13  }
  0x26   : > { %s953_s1 = sshll.u32 (!%p933_p2), %s950_s22, 3  ;;  %s236_s28 = scalar_lea.sflag (!%p933_p2), [#allocation6], %s950_s22 }
  0x27   : > { %s239_s30 = scalar_lea.vmem (!%p933_p2), [#allocation5], %s953_s1 }
  0x28   : > { %792 = dma.done.wait (%p901_p8), %s236_s28, 128  }
  0x29   : > { %794 = vsyncadd (%p901_p8), %s236_s28, 4294967168  ;;  %s245_s16 = sand.u32 1, %s881_s18   ;;  %s249_s26 = scalar_lea.vmem [#allocation8], %s953_s1 }
  0x2a   : > { %s246_s20 = scalar_lea.sflag [#allocation9], %s245_s16 }
  0x2b   : > { %796 = dma.done.wait (%p901_p8), %s246_s20, 256  }
  0x2c   : > { %798 = vsyncadd (%p901_p8), %s246_s20, 4294967040  ;;  %vm301_vm0 = vcmask 261120   ;;  %v827_v0 = vmov 0.0   ;;  %v306_v1 = vld [vmem:[%s249_s26] sm:$0xff]  ;;  %v303_v2 = vld [vmem:[%s239_s30] sm:$0xff]  ;;  %vm298_vm1 = vcmask 7168  }
  0x2d   : > { %302 = vst.msk [vmem:[#allocation4] sm:$0xff] %vm301_vm0, %v827_v0  ;;  %v307_v3 = vpack.c.bf16 %v306_v1, %v306_v1  ;;  %v304_v5 = vmul.f32 0.17677669, %v303_v2  ;;  %v828_v7 = vmov -inf   ;;  %vm331_vm2 = vcmask 64512   ;;  %s259_s18 = scalar_lea.vmem [#allocation10], %s953_s1 }
  0x2e   : > { %299 = vst.msk [vmem:[#allocation2] sm:$0xff] %vm298_vm1, %v828_v7  ;;  %v829_v11 = vmov 0   ;;  %v308_v16 = vld [vmem:[%s259_s18] sm:$0xff]  ;;  %vm366_vm3 = vcmask 1043456   ;;  %s562_s24 = sshll.u32 %s817_s15, 3  ;;  %s292_s21 = scalar_lea.vmem [#allocation11], %s953_s1 }
  0x2f   : > { %v315_v4 = vsel %vm301_vm0, %v307_v3, 0  ;;  %v305_v6 = vpack.c.bf16 %v304_v5, %v304_v5  ;;  %300 = vst.msk [vmem:[#allocation3] sm:$0xff] %vm298_vm1, %v827_v0  ;;  %640 = vset.pattern.permute.xlu0 %v829_v11  ;;  %641 = vset.pattern.permute.xlu1 %v829_v11  ;;  %v309_v17 = vpack.c.bf16 %v308_v16, %v308_v16  ;;  %s411_s19 = scalar_lea.hbm %s1021_s3, %s562_s24  ;;  %s413_s23 = sshll.u32 %s292_s21, 4  ;;  %s414_s23 = int_to_ptr.vmem [resolvable:$true] %s413_s23 }
  0x30   : > { %324 = vmatpush.bf16.xpose.msra.mxu0 %v315_v4  ;;  %642 = vset.pattern.permute.xlu2 %v829_v11  ;;  %s415_s6 = sshll.u32 %s411_s19, 4  ;;  %s400_s7 = scalar_lea.sflag [#allocation7], %s950_s22  ;;  %s416_s6 = int_to_ptr.hbm [resolvable:$true] %s415_s6 }
  0x31   : > { %v368_v18 = vsel %vm366_vm3, %v309_v17, 0  ;;  %s753_s8 = sshra.s32 %s416_s6, 4  ;;  %s759_s9 = scalar_lea.hbm %s1021_s3, 64  ;;  %s754_s8 = int_to_ptr.hbm [resolvable:$true] %s753_s8 }
  0x32   : > { %377 = vmatpush.bf16.msra.mxu1 %v368_v18  ;;  %s755_s10 = scalar_lea.hbm %s754_s8, 8  ;;  %p760_p6 = scmp.lt.s32.totalorder %s754_s8, %s1021_s3 }
  0x33   : > { %p756_p3 = scmp.ne.s32.totalorder %s754_s8, %s755_s10  ;;  %p761_p7 = scmp.lt.s32.totalorder %s759_s9, %s755_s10 }
  0x34   : > { %v355_v35 = vld [vmem:[#allocation4] sm:$0xff] }
  0x35   : > { %v330_v12 = vld [vmem:[#allocation2] sm:$0xff]  ;;  %p757_p4 = pnand %p756_p3, %p905_p9  ;;  %p762_p8 = por %p761_p7, %p760_p6 }
  0x36   : > { %v347_v27 = vld [vmem:[#allocation3] sm:$0xff] }
  0x37   : > { %559 = vmatmul.msk.bf16.vlgmr.msra.gmra.mxu0 %vm301_vm0, %v305_v6  ;;  %p758_p5 = pneg %p757_p4 }
  0x39   : > { %p763_p10 = pnand %p762_p8, %p758_p5 }
  0xb4   : > { %v326_v8 = vpop.f32.mrf.mxu0 }
  0xb5   : > { %v332_v9 = vsel %vm331_vm2, %v326_v8, -inf }
  0xb6   : > { %333 = vmax.xlane.f32.xlu0 %v332_v9 }
  0xbc   : > { %v328_v10 = vpop.f32.mrf.mxu0 }
 0x129   : > { %v334_v13 = vpop.xlane.xlu0 %333 }
 0x12a   : > { %v335_v14 = vmax.f32 %v330_v12, %v334_v13 }
 0x12c   : > { %v336_v15 = vsub.f32 %v330_v12, %v335_v14  ;;  %385 = vst.msk [vmem:[#allocation2] sm:$0xff] %vm298_vm1, %v335_v14  ;;  %341 = vperm.xlu0 %640, %v335_v14  }
 0x12e   : > { %v337_v25 = vmul.f32 1.442695, %v336_v15 }
 0x19e   : > { %v342_v19 = vpop.permute.xlu0 %341 }
 0x19f   : > { %v344_v20 = vsub.f32 %v326_v8, %v342_v19 }
 0x1a1   : > { %v345_v21 = vmul.f32 1.442695, %v344_v20 }
 0x1a3   : > { %643 = vpow2.f32 %v345_v21 }
 0x1a4   : > { %645 = vpow2.f32 %v337_v25 }
 0x1a9   : > { %v644_v22 = vpop.eup %643 }
 0x1aa   : > { %v349_v23 = vsel %vm331_vm2, %v644_v22, 0.0  ;;  %v362_v24 = vpack.c.bf16 %v644_v22, %v644_v22  ;;  %v646_v26 = vpop.eup %645 }
 0x1ab   : > { %350 = vadd.xlane.f32.xlu1 %v349_v23  ;;  %v348_v28 = vmul.f32 %v646_v26, %v347_v27 }
 0x1ac   : > { %560 = vmatmul.msk.bf16.vlgmr.msra.gmra.mxu1 %vm331_vm2, %v362_v24 }
 0x1c4   : > { %358 = vperm.xlu1 %641, %v646_v26  }
 0x21e   : > { %v351_v29 = vpop.xlane.xlu1 %350 }
 0x21f   : > { %v352_v30 = vadd.f32 %v351_v29, %v348_v28 }
 0x221   : > { %354 = vst.msk [vmem:[#allocation3] sm:$0xff] %vm298_vm1, %v352_v30 }
 0x228   : > { %v389_v31 = vld [vmem:[#allocation3] sm:$0xff] }
 0x229   : > { %v379_v32 = vpop.f32.mrf.mxu1  ;;  %647 = vrcp.f32 %v389_v31 }
 0x22f   : > { %v648_v33 = vpop.eup %647 }
 0x230   : > { %394 = vperm.xlu2 %642, %v648_v33  }
 0x231   : > { %v381_v34 = vpop.f32.mrf.mxu1 }
 0x236   : > { %v359_v36 = vpop.permute.xlu1 %358 }
 0x237   : > { %v361_v37 = vmul.f32 %v359_v36, %v355_v35 }
 0x239   : > { %v383_v38 = vadd.f32 %v379_v32, %v361_v37 }
 0x23b   : > { %384 = vst.msk [vmem:[#allocation4] sm:$0xff] %vm301_vm0, %v383_v38 }
 0x242   : > { %v391_v39 = vld [vmem:[#allocation4] sm:$0xff] }
 0x28a   : > { %v395_v40 = vpop.permute.xlu2 %394 }
 0x28b   : > { %v397_v41 = vmul.f32 %v395_v40, %v391_v39 }
 0x28d   : > { %398 = vst.msk [vmem:[%s292_s21] sm:$0xff] %vm301_vm0, %v397_v41 }
 0x28e   : > { %766 = shalt.err (!%p763_p10)
}
 0x28f   : > { %571 = dma.vmem_to_hbm [thread:$0]  (%p905_p9), %s414_s23, 128, %s416_s6, %s400_s7  }
 0x290 PF: > { %p588_p12 = scmp.ge.s32.totalorder %s825_s17, 2  ;;  %s427_s22 = sand.u32 1, %s805_s12  }
 0x291   : > { %s428_s28 = scalar_lea.sflag [#allocation7], %s427_s22 }
 0x292   : > { %p584_p13 = pnand %p588_p12, %p912_p11 }
 0x294   : > { %p585_p0 = pneg %p584_p13 }
 0x296   : > { %800 = dma.done.wait (%p585_p0), %s428_s28, 128  }
 0x297   : > { %802 = vsyncadd (%p585_p0), %s428_s28, 4294967168  ;;  %s22_s17 = sadd.s32 1, %s825_s17   ;;  %s1035_s30 = sld [smem:[#allocation17_spill]] }
 0x298   : > { %p19_p1 = scmp.ge.s32.totalorder %s22_s17, 10   ;;  %s1036_s15 = sld [smem:[#allocation15_spill]] }
 0x299   : > { %s1037_s16 = sld [smem:[#allocation16_spill]]  ;;  %s1038_s12 = smov %s809_s13 }
 0x29a   : > { %s1039_s13 = smov %s813_s14  ;;  %21 = sbr.rel (!%p19_p1) target bundleno = 10 (0xa), region = 109 }
 0x29d   : > { %s1040_s14 = smov %s1035_s30 }
 0x29f   :  { %434 = vsyncpa [#allocation6], 1 }
 0x2a0   :  { %436 = vsyncpa [#allocation6 + $0x1], 1 }
 0x2a1   :  { %437 = vsyncpa [#allocation9], 1 }
 0x2a2   :  { %439 = vsyncpa [#allocation9 + $0x1], 1 }
 0x2a3   :  { %440 = vsyncpa [#allocation7], 1 }
 0x2a4   :  { %442 = vsyncpa [#allocation7 + $0x1], 1 }

</bundles_post_ra>
